<compile_context>
chip_gen: v7x
topology: tpu7x:2x2x1
jax: 0.10.0
libtpu: 0.0.40
codegen_flags: <defaults>
</compile_context>

<pallas_src>
import functools
import math

import jax
import jax.numpy as jnp
from jax import lax
from jax.experimental import pallas as pl
from jax.experimental.pallas import tpu as pltpu


def gph_output_kernel(x_ref, w_ref, b_ref, res_ref, gamma_ref, beta_ref, o_ref,
                      *, eps):
    # x_ref: (tm, I)   w_ref: (I, H)   b_ref/gamma_ref/beta_ref: (1, H)
    # res_ref: (tm, H)                 o_ref: (tm, H)
    y = jnp.dot(x_ref[...], w_ref[...], preferred_element_type=jnp.float32)
    y = y + b_ref[...].astype(jnp.float32)
    # Dropout is identity at inference.
    y = y + res_ref[...].astype(jnp.float32)

    # LayerNorm over the last dim (eps inside rsqrt, two-pass variance for
    # numerical safety).  Gamma is folded into the normalization scale.
    mean = jnp.mean(y, axis=-1, keepdims=True)
    centered = y - mean
    var = jnp.mean(centered * centered, axis=-1, keepdims=True)
    scale = lax.rsqrt(var + eps) * gamma_ref[...].astype(jnp.float32)
    out = centered * scale + beta_ref[...].astype(jnp.float32)
    o_ref[...] = out.astype(o_ref.dtype)


def _physical_vmem_bytes():
    try:
        info = pltpu.get_tpu_info()
        for name in ("vmem_capacity_bytes", "vmem_size_bytes", "vmem_bytes"):
            v = getattr(info, name, None)
            if v:
                return int(v)
    except Exception:
        pass
    return 64 * 1024 * 1024  # conservative floor: v7x per-TensorCore VMEM


def gph_output(hidden_states, input_tensor, weight, bias, gamma, beta, *,
               eps=1e-12, tm=512, matmul_dtype=jnp.bfloat16, out_dtype=None):
    """hidden_states: [B,S,I]; input_tensor: [B,S,H]; weight: [I,H] (x @ W);
    bias / gamma / beta: [H]."""
    B, S, I = hidden_states.shape
    Iw, H = weight.shape
    assert Iw == I
    assert input_tensor.shape == (B, S, H)

    if out_dtype is None:
        out_dtype = hidden_states.dtype
    M = B * S

    x2d = hidden_states.reshape(M, I)
    r2d = input_tensor.reshape(M, H)  # DMA'd in its own dtype; f32 math in-kernel

    w = weight
    if matmul_dtype is not None:
        if x2d.dtype != matmul_dtype:
            x2d = x2d.astype(matmul_dtype)
        if w.dtype != matmul_dtype:
            # Prefer passing an already-cast (cached) weight to skip this pass.
            w = w.astype(matmul_dtype)

    b2d = bias.reshape(1, H)
    g2d = gamma.reshape(1, H)
    be2d = beta.reshape(1, H)

    tm_eff = min(tm, M)
    grid_m = pl.cdiv(M, tm_eff)  # ragged M -> implicit partial last block

    # VMEM budget: resident params + double-buffered activation tiles + f32
    # epilogue intermediates, with 2x margin, capped by physical VMEM.
    def nbytes(shape, dtype):
        return math.prod(shape) * jnp.dtype(dtype).itemsize

    need = (nbytes((I, H), w.dtype)                    # resident W (1 buf requested)
            + 3 * nbytes((1, H), jnp.float32)          # bias / gamma / beta
            + 2 * nbytes((tm_eff, I), x2d.dtype)       # double-buffered x tiles
            + 2 * nbytes((tm_eff, H), r2d.dtype)       # double-buffered residual
            + 2 * nbytes((tm_eff, H), out_dtype)       # double-buffered output
            + 3 * nbytes((tm_eff, H), jnp.float32))    # f32 y / centered scratch
    vmem_limit = int(min(max(2 * need, 32 * 1024 * 1024),
                         int(0.85 * _physical_vmem_bytes())))

    kernel = functools.partial(gph_output_kernel, eps=eps)

    def build(single_buffer_params):
        pm = {"pipeline_mode": pl.Buffered(1)} if single_buffer_params else {}
        grid_spec = pltpu.PrefetchScalarGridSpec(
            num_scalar_prefetch=0,
            grid=(grid_m,),
            in_specs=[
                pl.BlockSpec((tm_eff, I), lambda i: (i, 0)),    # x row tile
                pl.BlockSpec((I, H), lambda i: (0, 0), **pm),   # W: VMEM-resident
                pl.BlockSpec((1, H), lambda i: (0, 0), **pm),   # bias: resident
                pl.BlockSpec((tm_eff, H), lambda i: (i, 0)),    # residual row tile
                pl.BlockSpec((1, H), lambda i: (0, 0), **pm),   # gamma: resident
                pl.BlockSpec((1, H), lambda i: (0, 0), **pm),   # beta: resident
            ],
            out_specs=pl.BlockSpec((tm_eff, H), lambda i: (i, 0)),
        )
        return pl.pallas_call(
            kernel,
            out_shape=jax.ShapeDtypeStruct((M, H), out_dtype),
            grid_spec=grid_spec,
            compiler_params=pltpu.CompilerParams(
                dimension_semantics=("parallel",),
                vmem_limit_bytes=vmem_limit,
            ),
        )

    try:
        out2d = jax.block_until_ready(build(True)(x2d, w, b2d, r2d, g2d, be2d))
    except Exception:
        # Fallback if this JAX build rejects pipeline_mode on top-level
        # pallas_call BlockSpecs: default (double-buffered) resident params.
        out2d = build(False)(x2d, w, b2d, r2d, g2d, be2d)

    return out2d.reshape(B, S, H)


def reference(hidden_states, input_tensor, weight, bias, gamma, beta, eps=1e-12):
    y = jnp.einsum("bsi,ih->bsh", hidden_states, weight) + bias
    z = y + input_tensor
    mean = jnp.mean(z, axis=-1, keepdims=True)
    var = jnp.mean((z - mean) ** 2, axis=-1, keepdims=True)
    return (z - mean) * lax.rsqrt(var + eps) * gamma + beta


if __name__ == "__main__":
    # Small BERT-like config: intermediate_size=128, hidden_size=32.
    batch, seq, hidden, intermediate = 2, 8, 32, 128

    key = jax.random.PRNGKey(0)
    kx, kr, kw, kb, kg, kbe = jax.random.split(key, 6)

    bound = 1.0 / math.sqrt(intermediate)
    weight = jax.random.uniform(
        kw, (intermediate, hidden), jnp.float32, minval=-bound, maxval=bound)
    bias = jax.random.uniform(
        kb, (hidden,), jnp.float32, minval=-bound, maxval=bound)
    gamma = 1.0 + 0.05 * jax.random.normal(kg, (hidden,), jnp.float32)
    beta = 0.05 * jax.random.normal(kbe, (hidden,), jnp.float32)

    x = jax.random.normal(kx, (batch, seq, intermediate), jnp.float32)
    res = jax.random.normal(kr, (batch, seq, hidden), jnp.float32)

    ref = reference(x, res, weight, bias, gamma, beta)

    # Default path: bf16 MXU matmul with the weight cast hoisted out of the
    # hot path (cast once, reuse), f32 accumulate + f32 epilogue.
    w_bf16 = weight.astype(jnp.bfloat16)
    out = gph_output(x, res, w_bf16, bias, gamma, beta)
    out = jax.block_until_ready(out)
    assert out.shape == (batch, seq, hidden)
    assert jnp.allclose(out, ref, atol=0.1, rtol=0.1)

    # Exact-precision f32 matmul path (tight tolerance check).
    out_f32 = gph_output(x, res, weight, bias, gamma, beta, matmul_dtype=None)
    out_f32 = jax.block_until_ready(out_f32)
    assert jnp.allclose(out_f32, ref, atol=1e-4, rtol=1e-4)

    # Ragged row count exercises the implicit partial last block (M=15, tm=8),
    # with no wrapper-side jnp.pad of the activations.
    x_odd = jax.random.normal(kx, (3, 5, intermediate), jnp.float32)
    res_odd = jax.random.normal(kr, (3, 5, hidden), jnp.float32)
    out_odd = gph_output(x_odd, res_odd, weight, bias, gamma, beta,
                         tm=8, matmul_dtype=None)
    out_odd = jax.block_until_ready(out_odd)
    ref_odd = reference(x_odd, res_odd, weight, bias, gamma, beta)
    assert out_odd.shape == (3, 5, hidden)
    assert jnp.allclose(out_odd, ref_odd, atol=1e-4, rtol=1e-4)

    print("KERNEL_OK")
</pallas_src>

<mosaic_0001>
module attributes {stable_mosaic.version = 11 : i64} {
  func.func @gph_output_kernel(%arg0: i32, %arg1: memref<16x128xbf16, #tpu.memory_space<vmem>>, %arg2: memref<128x32xbf16, #tpu.memory_space<vmem>>, %arg3: memref<1x32xf32, #tpu.memory_space<vmem>>, %arg4: memref<16x32xf32, #tpu.memory_space<vmem>>, %arg5: memref<1x32xf32, #tpu.memory_space<vmem>>, %arg6: memref<1x32xf32, #tpu.memory_space<vmem>>, %arg7: memref<16x32xf32, #tpu.memory_space<vmem>>) attributes {dimension_semantics = [#tpu.dimension_semantics<parallel>], iteration_bounds = array<i64: 1>, scalar_prefetch = 0 : i64, scratch_operands = 0 : i64, tpu.core_type = #tpu.core_type<tc>, window_params = [{transform_indices = @transform_0, window_bounds = array<i64: 16, 128>}, {pipeline_mode = #tpu.pipeline_mode<synchronous>, transform_indices = @transform_1, window_bounds = array<i64: 128, 32>}, {pipeline_mode = #tpu.pipeline_mode<synchronous>, transform_indices = @transform_2, window_bounds = array<i64: 1, 32>}, {transform_indices = @transform_3, window_bounds = array<i64: 16, 32>}, {pipeline_mode = #tpu.pipeline_mode<synchronous>, transform_indices = @transform_4, window_bounds = array<i64: 1, 32>}, {pipeline_mode = #tpu.pipeline_mode<synchronous>, transform_indices = @transform_5, window_bounds = array<i64: 1, 32>}, {transform_indices = @transform_6, window_bounds = array<i64: 16, 32>}]} {
    %c0 = arith.constant 0 : index
    %c0_0 = arith.constant 0 : index
    %0 = vector.load %arg1[%c0, %c0_0] : memref<16x128xbf16, #tpu.memory_space<vmem>>, vector<16x128xbf16>
    %c0_1 = arith.constant 0 : index
    %c0_2 = arith.constant 0 : index
    %1 = vector.load %arg2[%c0_1, %c0_2] : memref<128x32xbf16, #tpu.memory_space<vmem>>, vector<128x32xbf16>
    %cst = arith.constant dense<0.000000e+00> : vector<16x32xf32>
    %2 = tpu.matmul %0, %1, %cst {dimension_numbers = #tpu.dot_dimension_numbers<[1], [0], [0], [1], [0, 0, 1, 1], [], []>} : vector<16x128xbf16>, vector<128x32xbf16>, vector<16x32xf32> -> vector<16x32xf32>
    %c0_3 = arith.constant 0 : index
    %c0_4 = arith.constant 0 : index
    %3 = vector.load %arg3[%c0_3, %c0_4] : memref<1x32xf32, #tpu.memory_space<vmem>>, vector<1x32xf32>
    %4 = vector.broadcast %3 : vector<1x32xf32> to vector<16x32xf32>
    %5 = arith.addf %2, %4 : vector<16x32xf32>
    %c0_5 = arith.constant 0 : index
    %c0_6 = arith.constant 0 : index
    %6 = vector.load %arg4[%c0_5, %c0_6] : memref<16x32xf32, #tpu.memory_space<vmem>>, vector<16x32xf32>
    %7 = arith.addf %5, %6 : vector<16x32xf32>
    %cst_7 = arith.constant dense<0.000000e+00> : vector<16xf32>
    %8 = vector.multi_reduction <add>, %7, %cst_7 [1] : vector<16x32xf32> to vector<16xf32>
    %9 = vector.shape_cast %8 : vector<16xf32> to vector<16x1xf32>
    %cst_8 = arith.constant 3.200000e+01 : f32
    %10 = vector.broadcast %cst_8 : f32 to vector<16x1xf32>
    %11 = arith.divf %9, %10 : vector<16x1xf32>
    %12 = vector.broadcast %11 : vector<16x1xf32> to vector<16x32xf32>
    %13 = arith.subf %7, %12 : vector<16x32xf32>
    %14 = arith.mulf %13, %13 : vector<16x32xf32>
    %cst_9 = arith.constant dense<0.000000e+00> : vector<16xf32>
    %15 = vector.multi_reduction <add>, %14, %cst_9 [1] : vector<16x32xf32> to vector<16xf32>
    %16 = vector.shape_cast %15 : vector<16xf32> to vector<16x1xf32>
    %cst_10 = arith.constant 3.200000e+01 : f32
    %17 = vector.broadcast %cst_10 : f32 to vector<16x1xf32>
    %18 = arith.divf %16, %17 : vector<16x1xf32>
    %cst_11 = arith.constant 9.99999996E-13 : f32
    %19 = vector.broadcast %cst_11 : f32 to vector<16x1xf32>
    %20 = arith.addf %18, %19 : vector<16x1xf32>
    %21 = math.rsqrt %20 : vector<16x1xf32>
    %c0_12 = arith.constant 0 : index
    %c0_13 = arith.constant 0 : index
    %22 = vector.load %arg5[%c0_12, %c0_13] : memref<1x32xf32, #tpu.memory_space<vmem>>, vector<1x32xf32>
    %23 = vector.broadcast %21 : vector<16x1xf32> to vector<16x32xf32>
    %24 = vector.broadcast %22 : vector<1x32xf32> to vector<16x32xf32>
    %25 = arith.mulf %23, %24 : vector<16x32xf32>
    %26 = arith.mulf %13, %25 : vector<16x32xf32>
    %c0_14 = arith.constant 0 : index
    %c0_15 = arith.constant 0 : index
    %27 = vector.load %arg6[%c0_14, %c0_15] : memref<1x32xf32, #tpu.memory_space<vmem>>, vector<1x32xf32>
    %28 = vector.broadcast %27 : vector<1x32xf32> to vector<16x32xf32>
    %29 = arith.addf %26, %28 : vector<16x32xf32>
    %c0_16 = arith.constant 0 : index
    %c0_17 = arith.constant 0 : index
    %30 = vector.load %arg7[%c0_16, %c0_17] : memref<16x32xf32, #tpu.memory_space<vmem>>, vector<16x32xf32>
    tpu.vector_store %arg7[%c0_16, %c0_17], %29 {strides = array<i32>} : memref<16x32xf32, #tpu.memory_space<vmem>>, vector<16x32xf32>,
    return
  }
  func.func @transform_0(%arg0: i32) -> (i32, i32) {
    %c0_i32 = arith.constant 0 : i32
    %c0_i32_0 = arith.constant 0 : i32
    return %arg0, %c0_i32 : i32, i32
  }
  func.func @transform_1(%arg0: i32) -> (i32, i32) {
    %c0_i32 = arith.constant 0 : i32
    %c0_i32_0 = arith.constant 0 : i32
    %c0_i32_1 = arith.constant 0 : i32
    return %c0_i32, %c0_i32_0 : i32, i32
  }
  func.func @transform_2(%arg0: i32) -> (i32, i32) {
    %c0_i32 = arith.constant 0 : i32
    %c0_i32_0 = arith.constant 0 : i32
    %c0_i32_1 = arith.constant 0 : i32
    return %c0_i32, %c0_i32_0 : i32, i32
  }
  func.func @transform_3(%arg0: i32) -> (i32, i32) {
    %c0_i32 = arith.constant 0 : i32
    %c0_i32_0 = arith.constant 0 : i32
    return %arg0, %c0_i32 : i32, i32
  }
  func.func @transform_4(%arg0: i32) -> (i32, i32) {
    %c0_i32 = arith.constant 0 : i32
    %c0_i32_0 = arith.constant 0 : i32
    %c0_i32_1 = arith.constant 0 : i32
    return %c0_i32, %c0_i32_0 : i32, i32
  }
  func.func @transform_5(%arg0: i32) -> (i32, i32) {
    %c0_i32 = arith.constant 0 : i32
    %c0_i32_0 = arith.constant 0 : i32
    %c0_i32_1 = arith.constant 0 : i32
    return %c0_i32, %c0_i32_0 : i32, i32
  }
  func.func @transform_6(%arg0: i32) -> (i32, i32) {
    %c0_i32 = arith.constant 0 : i32
    %c0_i32_0 = arith.constant 0 : i32
    return %arg0, %c0_i32 : i32, i32
  }
}

module attributes {stable_mosaic.version = 11 : i64} {
  func.func @gph_output_kernel(%arg0: i32, %arg1: memref<16x128xbf16, #tpu.memory_space<vmem>>, %arg2: memref<128x32xbf16, #tpu.memory_space<vmem>>, %arg3: memref<1x32xf32, #tpu.memory_space<vmem>>, %arg4: memref<16x32xf32, #tpu.memory_space<vmem>>, %arg5: memref<1x32xf32, #tpu.memory_space<vmem>>, %arg6: memref<1x32xf32, #tpu.memory_space<vmem>>, %arg7: memref<16x32xf32, #tpu.memory_space<vmem>>) attributes {dimension_semantics = [#tpu.dimension_semantics<parallel>], iteration_bounds = array<i64: 1>, scalar_prefetch = 0 : i64, scratch_operands = 0 : i64, tpu.core_type = #tpu.core_type<tc>, window_params = [{transform_indices = @transform_0, window_bounds = array<i64: 16, 128>}, {pipeline_mode = #tpu.pipeline_mode<synchronous>, transform_indices = @transform_1, window_bounds = array<i64: 128, 32>}, {pipeline_mode = #tpu.pipeline_mode<synchronous>, transform_indices = @transform_2, window_bounds = array<i64: 1, 32>}, {transform_indices = @transform_3, window_bounds = array<i64: 16, 32>}, {pipeline_mode = #tpu.pipeline_mode<synchronous>, transform_indices = @transform_4, window_bounds = array<i64: 1, 32>}, {pipeline_mode = #tpu.pipeline_mode<synchronous>, transform_indices = @transform_5, window_bounds = array<i64: 1, 32>}, {transform_indices = @transform_6, window_bounds = array<i64: 16, 32>}]} {
    %c0 = arith.constant 0 : index
    %c0_0 = arith.constant 0 : index
    %0 = vector.load %arg1[%c0, %c0_0] : memref<16x128xbf16, #tpu.memory_space<vmem>>, vector<16x128xbf16>
    %c0_1 = arith.constant 0 : index
    %c0_2 = arith.constant 0 : index
    %1 = vector.load %arg2[%c0_1, %c0_2] : memref<128x32xbf16, #tpu.memory_space<vmem>>, vector<128x32xbf16>
    %cst = arith.constant dense<0.000000e+00> : vector<16x32xf32>
    %2 = tpu.matmul %0, %1, %cst {dimension_numbers = #tpu.dot_dimension_numbers<[1], [0], [0], [1], [0, 0, 1, 1], [], []>} : vector<16x128xbf16>, vector<128x32xbf16>, vector<16x32xf32> -> vector<16x32xf32>
    %c0_3 = arith.constant 0 : index
    %c0_4 = arith.constant 0 : index
    %3 = vector.load %arg3[%c0_3, %c0_4] : memref<1x32xf32, #tpu.memory_space<vmem>>, vector<1x32xf32>
    %4 = vector.broadcast %3 : vector<1x32xf32> to vector<16x32xf32>
    %5 = arith.addf %2, %4 : vector<16x32xf32>
    %c0_5 = arith.constant 0 : index
    %c0_6 = arith.constant 0 : index
    %6 = vector.load %arg4[%c0_5, %c0_6] : memref<16x32xf32, #tpu.memory_space<vmem>>, vector<16x32xf32>
    %7 = arith.addf %5, %6 : vector<16x32xf32>
    %cst_7 = arith.constant dense<0.000000e+00> : vector<16xf32>
    %8 = vector.multi_reduction <add>, %7, %cst_7 [1] : vector<16x32xf32> to vector<16xf32>
    %9 = vector.shape_cast %8 : vector<16xf32> to vector<16x1xf32>
    %cst_8 = arith.constant 3.200000e+01 : f32
    %10 = vector.broadcast %cst_8 : f32 to vector<16x1xf32>
    %11 = arith.divf %9, %10 : vector<16x1xf32>
    %12 = vector.broadcast %11 : vector<16x1xf32> to vector<16x32xf32>
    %13 = arith.subf %7, %12 : vector<16x32xf32>
    %14 = arith.mulf %13, %13 : vector<16x32xf32>
    %cst_9 = arith.constant dense<0.000000e+00> : vector<16xf32>
    %15 = vector.multi_reduction <add>, %14, %cst_9 [1] : vector<16x32xf32> to vector<16xf32>
    %16 = vector.shape_cast %15 : vector<16xf32> to vector<16x1xf32>
    %cst_10 = arith.constant 3.200000e+01 : f32
    %17 = vector.broadcast %cst_10 : f32 to vector<16x1xf32>
    %18 = arith.divf %16, %17 : vector<16x1xf32>
    %cst_11 = arith.constant 9.99999996E-13 : f32
    %19 = vector.broadcast %cst_11 : f32 to vector<16x1xf32>
    %20 = arith.addf %18, %19 : vector<16x1xf32>
    %21 = math.rsqrt %20 : vector<16x1xf32>
    %c0_12 = arith.constant 0 : index
    %c0_13 = arith.constant 0 : index
    %22 = vector.load %arg5[%c0_12, %c0_13] : memref<1x32xf32, #tpu.memory_space<vmem>>, vector<1x32xf32>
    %23 = vector.broadcast %21 : vector<16x1xf32> to vector<16x32xf32>
    %24 = vector.broadcast %22 : vector<1x32xf32> to vector<16x32xf32>
    %25 = arith.mulf %23, %24 : vector<16x32xf32>
    %26 = arith.mulf %13, %25 : vector<16x32xf32>
    %c0_14 = arith.constant 0 : index
    %c0_15 = arith.constant 0 : index
    %27 = vector.load %arg6[%c0_14, %c0_15] : memref<1x32xf32, #tpu.memory_space<vmem>>, vector<1x32xf32>
    %28 = vector.broadcast %27 : vector<1x32xf32> to vector<16x32xf32>
    %29 = arith.addf %26, %28 : vector<16x32xf32>
    %c0_16 = arith.constant 0 : index
    %c0_17 = arith.constant 0 : index
    %30 = vector.load %arg7[%c0_16, %c0_17] : memref<16x32xf32, #tpu.memory_space<vmem>>, vector<16x32xf32>
    tpu.vector_store %arg7[%c0_16, %c0_17], %29 {strides = array<i32>} : memref<16x32xf32, #tpu.memory_space<vmem>>, vector<16x32xf32>,
    return
  }
  func.func @transform_0(%arg0: i32) -> (i32, i32) {
    %c0_i32 = arith.constant 0 : i32
    %c0_i32_0 = arith.constant 0 : i32
    return %arg0, %c0_i32 : i32, i32
  }
  func.func @transform_1(%arg0: i32) -> (i32, i32) {
    %c0_i32 = arith.constant 0 : i32
    %c0_i32_0 = arith.constant 0 : i32
    %c0_i32_1 = arith.constant 0 : i32
    return %c0_i32, %c0_i32_0 : i32, i32
  }
  func.func @transform_2(%arg0: i32) -> (i32, i32) {
    %c0_i32 = arith.constant 0 : i32
    %c0_i32_0 = arith.constant 0 : i32
    %c0_i32_1 = arith.constant 0 : i32
    return %c0_i32, %c0_i32_0 : i32, i32
  }
  func.func @transform_3(%arg0: i32) -> (i32, i32) {
    %c0_i32 = arith.constant 0 : i32
    %c0_i32_0 = arith.constant 0 : i32
    return %arg0, %c0_i32 : i32, i32
  }
  func.func @transform_4(%arg0: i32) -> (i32, i32) {
    %c0_i32 = arith.constant 0 : i32
    %c0_i32_0 = arith.constant 0 : i32
    %c0_i32_1 = arith.constant 0 : i32
    return %c0_i32, %c0_i32_0 : i32, i32
  }
  func.func @transform_5(%arg0: i32) -> (i32, i32) {
    %c0_i32 = arith.constant 0 : i32
    %c0_i32_0 = arith.constant 0 : i32
    %c0_i32_1 = arith.constant 0 : i32
    return %c0_i32, %c0_i32_0 : i32, i32
  }
  func.func @transform_6(%arg0: i32) -> (i32, i32) {
    %c0_i32 = arith.constant 0 : i32
    %c0_i32_0 = arith.constant 0 : i32
    return %arg0, %c0_i32 : i32, i32
  }
}

</mosaic_0001>

<bundles_post_ra>
// kernel: tpu_custom_call.1
= control target key start
LH: loop header
LB: loop body
LE: loop exit
PB: predicated region body
PF: predicated region fallthrough
CT: control target
= control target key end

     0   :  { %v296_v1 = vmov 0.0   ;;  %vm297_vm0 = vmmov 0   ;;  %s396_s0 = inlined_call_operand.vmem [shape: bf16[16,128], index: 0, kind: input, shape index: {}]   ;;  %s397_s1 = inlined_call_operand.vmem [shape: bf16[128,32], index: 1, kind: input, shape index: {}]   ;;  %s398_s2 = inlined_call_operand.vmem [shape: f32[1,32], index: 2, kind: input, shape index: {}]   ;;  %s399_s3 = inlined_call_operand.vmem [shape: f32[16,32], index: 3, kind: input, shape index: {}]   ;;  %s400_s4 = inlined_call_operand.vmem [shape: f32[1,32], index: 4, kind: input, shape index: {}]   ;;  %s401_s5 = inlined_call_operand.vmem [shape: f32[1,32], index: 5, kind: input, shape index: {}]   ;;  %s402_s6 = inlined_call_operand.hbm [shape: f32[16,32], index: 6, kind: output, shape index: {}]  }
   0x1   :  { %v259_v0 = vld [vmem:[%s397_s1] sm:$0xff]   ;;  %234 = vmatprep.subr.bf16.mxu0 %v296_v1  ;;  %v260_v2 = vld [vmem:[%s397_s1 + $0x8] sm:$0xff]   ;;  %250 = vmatprep.mubr.msk.bf16.mxu0 %vm297_vm0, %v296_v1  ;;  %v261_v3 = vld [vmem:[%s397_s1 + $0x10] sm:$0xff]  }
   0x2   :  { %235 = vmatpush3.bf16.msra.mxu0 %v259_v0 }
   0x3   :  { %236 = vmatprep.subr.bf16.mxu0 %v296_v1 }
   0x6   :  { %237 = vmatpush3.bf16.msra.mxu0 %v260_v2 }
   0x7   :  { %238 = vmatprep.subr.bf16.mxu0 %v296_v1 }
   0x8   :  { %11 = vsyncpa [#allocation3], 0  ;;  %v262_v4 = vld [vmem:[%s397_s1 + $0x18] sm:$0xff]   ;;  %v263_v5 = vld [vmem:[%s397_s1 + $0x20] sm:$0xff]   ;;  %vm149_vm1 = vcmask 261120   ;;  %s298_s21 = smov [#allocation2]  }
   0x9   :  { %v264_v6 = vld [vmem:[%s397_s1 + $0x28] sm:$0xff]   ;;  %v265_v7 = vld [vmem:[%s397_s1 + $0x30] sm:$0xff]   ;;  %v266_v8 = vld [vmem:[%s397_s1 + $0x38] sm:$0xff]   ;;  %s202_s22 = sshll.u32 %s298_s21, 4  ;;  %s203_s22 = int_to_ptr.vmem [resolvable:$true] %s202_s22 }
   0xa   :  { %239 = vmatpush3.bf16.msra.mxu0 %v261_v3  ;;  %v267_v9 = vld [vmem:[%s396_s0] sm:$0xff]   ;;  %v146_v16 = vld [vmem:[%s399_s3 + $0x8] sm:$0xff]  ;;  %p277_p1 = scmp.lt.s32.totalorder %s203_s22, %s203_s22 }
   0xb   :  { %240 = vmatprep.subr.bf16.mxu0 %v296_v1  ;;  %v213_v10 = vld [vmem:[%s398_s2] ss:$0 sm:$0xff] }
   0xc   :  { %v145_v12 = vld [vmem:[%s399_s3] sm:$0xff] }
   0xd   :  { %v223_v39 = vld [vmem:[%s400_s4] ss:$0 sm:$0xff]  ;;  %s272_s4 = scalar_lea.vmem %s203_s22, 256 }
   0xe   :  { %241 = vmatpush3.bf16.msra.mxu0 %v262_v4  ;;  %v224_v42 = vld [vmem:[%s401_s5] ss:$0 sm:$0xff]  ;;  %p273_p0 = scmp.ne.s32.totalorder %s203_s22, %s272_s4  ;;  %p278_p2 = scmp.lt.s32.totalorder %s272_s4, %s272_s4 }
   0xf   :  { %242 = vmatprep.subr.bf16.mxu0 %v296_v1 }
  0x10   :  { %p279_p3 = por %p278_p2, %p277_p1 }
  0x12   :  { %243 = vmatpush3.bf16.msra.mxu0 %v263_v5  ;;  %p280_p4 = pnand %p279_p3, %p273_p0 }
  0x13   :  { %244 = vmatprep.subr.bf16.mxu0 %v296_v1 }
  0x16   :  { %245 = vmatpush3.bf16.msra.mxu0 %v264_v6 }
  0x17   :  { %246 = vmatprep.subr.bf16.mxu0 %v296_v1 }
  0x1a   :  { %247 = vmatpush3.bf16.msra.mxu0 %v265_v7 }
  0x1b   :  { %248 = vmatprep.subr.bf16.mxu0 %v296_v1 }
  0x1e   :  { %249 = vmatpush3.bf16.msra.mxu0 %v266_v8 }
  0x21   :  { %251 = vmatmul.mubr.bf16.vlgmr.msra.gmra.mrb[0].mxu0 %v267_v9 }
  0xf4   :  { %v138_v11 = vpop.f32.mrb[0].mxu0 }
  0xf5   :  { %v139_v13 = vadd.f32 %v213_v10, %v138_v11  ;;  %v252_v14 = vpop.f32.mrb[1].mxu0 }
  0xf6   :  { %v141_v15 = vpop.f32.mrb[2].mxu0 }
  0xf7   :  { %v142_v17 = vadd.f32 %v213_v10, %v141_v15  ;;  %v253_v18 = vpop.f32.mrb[3].mxu0  ;;  %v147_v19 = vadd.f32 %v145_v12, %v139_v13 }
  0xf9   :  { %v150_v20 = vsel %vm149_vm1, %v147_v19, 0.0  ;;  %v148_v21 = vadd.f32 %v146_v16, %v142_v17 }
  0xfa   :  { %151 = vadd.xlane.f32.xlu0 %v150_v20 }
  0xfb   :  { %v153_v22 = vsel %vm149_vm1, %v148_v21, 0.0 }
  0xfe   :  { %154 = vadd.xlane.f32.xlu0 %v153_v22 }
 0x187   :  { %v152_v23 = vpop.xlane.xlu0 %151 }
 0x188   :  { %v157_v24 = vmul.f32 0.03125, %v152_v23 }
 0x18a   :  { %v159_v25 = vsub.f32 %v147_v19, %v157_v24 }
 0x18b   :  { %v155_v26 = vpop.xlane.xlu0 %154 }
 0x18c   :  { %v158_v27 = vmul.f32 0.03125, %v155_v26  ;;  %v161_v28 = vmul.f32 %v159_v25, %v159_v25 }
 0x18e   :  { %v160_v29 = vsub.f32 %v148_v21, %v158_v27  ;;  %v163_v30 = vsel %vm149_vm1, %v161_v28, 0.0 }
 0x18f   :  { %164 = vadd.xlane.f32.xlu1 %v163_v30 }
 0x190   :  { %v162_v31 = vmul.f32 %v160_v29, %v160_v29 }
 0x192   :  { %v166_v32 = vsel %vm149_vm1, %v162_v31, 0.0 }
 0x193   :  { %167 = vadd.xlane.f32.xlu1 %v166_v32 }
 0x21c   :  { %v165_v33 = vpop.xlane.xlu1 %164 }
 0x21d   :  { %v169_v34 = vmul.f32 0.03125, %v165_v33 }
 0x21f   :  { %v171_v35 = vadd.f32 1e-12, %v169_v34 }
 0x220   :  { %v168_v36 = vpop.xlane.xlu1 %167 }
 0x221   :  { %268 = vrsqrt.f32 %v171_v35  ;;  %v170_v37 = vmul.f32 0.03125, %v168_v36 }
 0x223   :  { %v172_v38 = vadd.f32 1e-12, %v170_v37 }
 0x225   :  { %270 = vrsqrt.f32 %v172_v38 }
 0x22b   :  { %v269_v40 = vpop.eup %268 }
 0x22c   :  { %v182_v41 = vmul.f32 %v269_v40, %v223_v39 }
 0x22e   :  { %v184_v43 = vmul.f32 %v182_v41, %v159_v25 }
 0x22f   :  { %v271_v44 = vpop.eup %270 }
 0x230   :  { %v183_v45 = vmul.f32 %v271_v44, %v223_v39  ;;  %v193_v46 = vadd.f32 %v224_v42, %v184_v43 }
 0x232   :  { %v185_v47 = vmul.f32 %v183_v45, %v160_v29  ;;  %195 = vst.msk [vmem:[#allocation2] sm:$0xff] %vm149_vm1, %v193_v46 }
 0x234   :  { %v194_v48 = vadd.f32 %v224_v42, %v185_v47 }
 0x236   :  { %196 = vst.msk [vmem:[#allocation2 + $0x8] sm:$0xff] %vm149_vm1, %v194_v48 }
 0x237   :  { %283 = shalt.err (!%p280_p4)
}
 0x238   :  { %s284_s24 = scalar_lea.hbm %s402_s6, 256 }
 0x239   :  { %p285_p5 = scmp.ne.s32.totalorder %s402_s6, %s284_s24  ;;  %p288_p6 = scmp.lt.u32.totalorder %s284_s24, %s402_s6 }
 0x23b   :  { %p290_p7 = pnand %p288_p6, %p285_p5 }
 0x23d   :  { %293 = shalt.err (!%p290_p7)
}
 0x23e   :  { %s299_s29 = smov 128   ;;  %s300_s30 = smov 8  }
 0x23f   :  { %208 = dma.vmem_to_hbm [thread:$0]  %s203_s22, 256, %s402_s6, [#allocation3], %s299_s29, %s299_s29, %s300_s30  }
 0x240   :  { %294 = dma.done.wait [#allocation3], 256  }
 0x241   :  { %295 = vsyncadd [#allocation3], 4294967040 }
 0x242   :  { %212 = vsyncpa [#allocation3], 1 }

// kernel: tpu_custom_call.1
= control target key start
LH: loop header
LB: loop body
LE: loop exit
PB: predicated region body
PF: predicated region fallthrough
CT: control target
= control target key end

     0   :  { %v296_v1 = vmov 0.0   ;;  %vm297_vm0 = vmmov 0   ;;  %s396_s0 = inlined_call_operand.vmem [shape: bf16[16,128], index: 0, kind: input, shape index: {}]   ;;  %s397_s1 = inlined_call_operand.vmem [shape: bf16[128,32], index: 1, kind: input, shape index: {}]   ;;  %s398_s2 = inlined_call_operand.vmem [shape: f32[1,32], index: 2, kind: input, shape index: {}]   ;;  %s399_s3 = inlined_call_operand.vmem [shape: f32[16,32], index: 3, kind: input, shape index: {}]   ;;  %s400_s4 = inlined_call_operand.vmem [shape: f32[1,32], index: 4, kind: input, shape index: {}]   ;;  %s401_s5 = inlined_call_operand.vmem [shape: f32[1,32], index: 5, kind: input, shape index: {}]   ;;  %s402_s6 = inlined_call_operand.hbm [shape: f32[16,32], index: 6, kind: output, shape index: {}]  }
   0x1   :  { %v259_v0 = vld [vmem:[%s397_s1] sm:$0xff]   ;;  %234 = vmatprep.subr.bf16.mxu0 %v296_v1  ;;  %v260_v2 = vld [vmem:[%s397_s1 + $0x8] sm:$0xff]   ;;  %250 = vmatprep.mubr.msk.bf16.mxu0 %vm297_vm0, %v296_v1  ;;  %v261_v3 = vld [vmem:[%s397_s1 + $0x10] sm:$0xff]  }
   0x2   :  { %235 = vmatpush3.bf16.msra.mxu0 %v259_v0 }
   0x3   :  { %236 = vmatprep.subr.bf16.mxu0 %v296_v1 }
   0x6   :  { %237 = vmatpush3.bf16.msra.mxu0 %v260_v2 }
   0x7   :  { %238 = vmatprep.subr.bf16.mxu0 %v296_v1 }
   0x8   :  { %11 = vsyncpa [#allocation3], 0  ;;  %v262_v4 = vld [vmem:[%s397_s1 + $0x18] sm:$0xff]   ;;  %v263_v5 = vld [vmem:[%s397_s1 + $0x20] sm:$0xff]   ;;  %vm149_vm1 = vcmask 261120   ;;  %s298_s21 = smov [#allocation2]  }
   0x9   :  { %v264_v6 = vld [vmem:[%s397_s1 + $0x28] sm:$0xff]   ;;  %v265_v7 = vld [vmem:[%s397_s1 + $0x30] sm:$0xff]   ;;  %v266_v8 = vld [vmem:[%s397_s1 + $0x38] sm:$0xff]   ;;  %s202_s22 = sshll.u32 %s298_s21, 4  ;;  %s203_s22 = int_to_ptr.vmem [resolvable:$true] %s202_s22 }
   0xa   :  { %239 = vmatpush3.bf16.msra.mxu0 %v261_v3  ;;  %v267_v9 = vld [vmem:[%s396_s0] sm:$0xff]   ;;  %v146_v16 = vld [vmem:[%s399_s3 + $0x8] sm:$0xff]  ;;  %p277_p1 = scmp.lt.s32.totalorder %s203_s22, %s203_s22 }
   0xb   :  { %240 = vmatprep.subr.bf16.mxu0 %v296_v1  ;;  %v213_v10 = vld [vmem:[%s398_s2] ss:$0 sm:$0xff] }
   0xc   :  { %v145_v12 = vld [vmem:[%s399_s3] sm:$0xff] }
   0xd   :  { %v223_v39 = vld [vmem:[%s400_s4] ss:$0 sm:$0xff]  ;;  %s272_s4 = scalar_lea.vmem %s203_s22, 256 }
   0xe   :  { %241 = vmatpush3.bf16.msra.mxu0 %v262_v4  ;;  %v224_v42 = vld [vmem:[%s401_s5] ss:$0 sm:$0xff]  ;;  %p273_p0 = scmp.ne.s32.totalorder %s203_s22, %s272_s4  ;;  %p278_p2 = scmp.lt.s32.totalorder %s272_s4, %s272_s4 }
   0xf   :  { %242 = vmatprep.subr.bf16.mxu0 %v296_v1 }
  0x10   :  { %p279_p3 = por %p278_p2, %p277_p1 }
  0x12   :  { %243 = vmatpush3.bf16.msra.mxu0 %v263_v5  ;;  %p280_p4 = pnand %p279_p3, %p273_p0 }
  0x13   :  { %244 = vmatprep.subr.bf16.mxu0 %v296_v1 }
  0x16   :  { %245 = vmatpush3.bf16.msra.mxu0 %v264_v6 }
  0x17   :  { %246 = vmatprep.subr.bf16.mxu0 %v296_v1 }
  0x1a   :  { %247 = vmatpush3.bf16.msra.mxu0 %v265_v7 }
  0x1b   :  { %248 = vmatprep.subr.bf16.mxu0 %v296_v1 }
  0x1e   :  { %249 = vmatpush3.bf16.msra.mxu0 %v266_v8 }
  0x21   :  { %251 = vmatmul.mubr.bf16.vlgmr.msra.gmra.mrb[0].mxu0 %v267_v9 }
  0xf4   :  { %v138_v11 = vpop.f32.mrb[0].mxu0 }
  0xf5   :  { %v139_v13 = vadd.f32 %v213_v10, %v138_v11  ;;  %v252_v14 = vpop.f32.mrb[1].mxu0 }
  0xf6   :  { %v141_v15 = vpop.f32.mrb[2].mxu0 }
  0xf7   :  { %v142_v17 = vadd.f32 %v213_v10, %v141_v15  ;;  %v253_v18 = vpop.f32.mrb[3].mxu0  ;;  %v147_v19 = vadd.f32 %v145_v12, %v139_v13 }
  0xf9   :  { %v150_v20 = vsel %vm149_vm1, %v147_v19, 0.0  ;;  %v148_v21 = vadd.f32 %v146_v16, %v142_v17 }
  0xfa   :  { %151 = vadd.xlane.f32.xlu0 %v150_v20 }
  0xfb   :  { %v153_v22 = vsel %vm149_vm1, %v148_v21, 0.0 }
  0xfe   :  { %154 = vadd.xlane.f32.xlu0 %v153_v22 }
 0x187   :  { %v152_v23 = vpop.xlane.xlu0 %151 }
 0x188   :  { %v157_v24 = vmul.f32 0.03125, %v152_v23 }
 0x18a   :  { %v159_v25 = vsub.f32 %v147_v19, %v157_v24 }
 0x18b   :  { %v155_v26 = vpop.xlane.xlu0 %154 }
 0x18c   :  { %v158_v27 = vmul.f32 0.03125, %v155_v26  ;;  %v161_v28 = vmul.f32 %v159_v25, %v159_v25 }
 0x18e   :  { %v160_v29 = vsub.f32 %v148_v21, %v158_v27  ;;  %v163_v30 = vsel %vm149_vm1, %v161_v28, 0.0 }
 0x18f   :  { %164 = vadd.xlane.f32.xlu1 %v163_v30 }
 0x190   :  { %v162_v31 = vmul.f32 %v160_v29, %v160_v29 }
 0x192   :  { %v166_v32 = vsel %vm149_vm1, %v162_v31, 0.0 }
 0x193   :  { %167 = vadd.xlane.f32.xlu1 %v166_v32 }
 0x21c   :  { %v165_v33 = vpop.xlane.xlu1 %164 }
 0x21d   :  { %v169_v34 = vmul.f32 0.03125, %v165_v33 }
 0x21f   :  { %v171_v35 = vadd.f32 1e-12, %v169_v34 }
 0x220   :  { %v168_v36 = vpop.xlane.xlu1 %167 }
 0x221   :  { %268 = vrsqrt.f32 %v171_v35  ;;  %v170_v37 = vmul.f32 0.03125, %v168_v36 }
 0x223   :  { %v172_v38 = vadd.f32 1e-12, %v170_v37 }
 0x225   :  { %270 = vrsqrt.f32 %v172_v38 }
 0x22b   :  { %v269_v40 = vpop.eup %268 }
 0x22c   :  { %v182_v41 = vmul.f32 %v269_v40, %v223_v39 }
 0x22e   :  { %v184_v43 = vmul.f32 %v182_v41, %v159_v25 }
 0x22f   :  { %v271_v44 = vpop.eup %270 }
 0x230   :  { %v183_v45 = vmul.f32 %v271_v44, %v223_v39  ;;  %v193_v46 = vadd.f32 %v224_v42, %v184_v43 }
 0x232   :  { %v185_v47 = vmul.f32 %v183_v45, %v160_v29  ;;  %195 = vst.msk [vmem:[#allocation2] sm:$0xff] %vm149_vm1, %v193_v46 }
 0x234   :  { %v194_v48 = vadd.f32 %v224_v42, %v185_v47 }
 0x236   :  { %196 = vst.msk [vmem:[#allocation2 + $0x8] sm:$0xff] %vm149_vm1, %v194_v48 }
 0x237   :  { %283 = shalt.err (!%p280_p4)
}
 0x238   :  { %s284_s24 = scalar_lea.hbm %s402_s6, 256 }
 0x239   :  { %p285_p5 = scmp.ne.s32.totalorder %s402_s6, %s284_s24  ;;  %p288_p6 = scmp.lt.u32.totalorder %s284_s24, %s402_s6 }
 0x23b   :  { %p290_p7 = pnand %p288_p6, %p285_p5 }
 0x23d   :  { %293 = shalt.err (!%p290_p7)
}
 0x23e   :  { %s299_s29 = smov 128   ;;  %s300_s30 = smov 8  }
 0x23f   :  { %208 = dma.vmem_to_hbm [thread:$0]  %s203_s22, 256, %s402_s6, [#allocation3], %s299_s29, %s299_s29, %s300_s30  }
 0x240   :  { %294 = dma.done.wait [#allocation3], 256  }
 0x241   :  { %295 = vsyncadd [#allocation3], 4294967040 }
 0x242   :  { %212 = vsyncpa [#allocation3], 1 }

</bundles_post_ra>
